<compile_context>
chip_gen: v7x
topology: tpu7x:2x2x1
jax: 0.10.0
libtpu: 0.0.40
codegen_flags: <defaults>
</compile_context>

<pallas_src>
import functools

import jax
import jax.numpy as jnp
from jax.experimental import pallas as pl
from jax.experimental.pallas import tpu as pltpu


def _focal_loss_kernel(x_ref, t_ref, out_ref, *, gamma, ignore_index, hw,
                       tile_r, tps, acc_r, needs_pix_mask, approx_recip):
    """One (batch, split, tile) grid step.

    x_ref  : (1, C, TILE_R, 128) logits block (pixels dense on sublanes+lanes)
    t_ref  : (1, 1, TILE_R, 128) int32 targets block
    out_ref: (1, 1, ACC_R, 128)  f32 per-(batch, split) partial-sum accumulator
    """
    s = pl.program_id(1)
    j = pl.program_id(2)

    @pl.when(j == 0)
    def _():
        out_ref[...] = jnp.zeros_like(out_ref)

    num_classes = x_ref.shape[1]
    t = t_ref[0, 0]                                       # (TILE_R, 128) int32

    # ---- stable softmax pieces: unrolled class loop on dense (R,128) vregs --
    m = x_ref[0, 0].astype(jnp.float32)
    for c in range(1, num_classes):
        m = jnp.maximum(m, x_ref[0, c].astype(jnp.float32))

    sumexp = jnp.zeros_like(m)
    tgt_e = jnp.zeros_like(m)         # exp(x_target - m), reused for pt
    tgt_logit = jnp.zeros_like(m)     # x_target
    # TODO(synk): targets >= C (other than ignore_index) silently give
    # tgt_logit = 0 (ce = logsumexp) instead of raising like PyTorch does.
    for c in range(num_classes):
        xc = x_ref[0, c].astype(jnp.float32)
        ec = jnp.exp(xc - m)
        sumexp = sumexp + ec
        is_c = t == c
        tgt_e = jnp.where(is_c, ec, tgt_e)
        tgt_logit = jnp.where(is_c, xc, tgt_logit)

    ce = jnp.log(sumexp) + m - tgt_logit                  # (TILE_R, 128)
    # pt = softmax[target]; reuses the exponentials above (no second exp).
    pt = tgt_e * pl.reciprocal(sumexp, approx=approx_recip)

    one_m_pt = 1.0 - pt
    g = float(gamma)
    if g == 0.0:
        weight = jnp.ones_like(one_m_pt)
    elif g.is_integer() and 0 < g <= 16:
        # Integer gamma (default 2.0): multiply chain -> no pow / log(<=0).
        weight = one_m_pt
        for _ in range(int(g) - 1):
            weight = weight * one_m_pt
    else:
        weight = jnp.power(jnp.maximum(one_m_pt, 0.0), g)

    valid = t != ignore_index
    if needs_pix_mask:
        # Logical (unclamped) tile index: masks padded tails, partial last
        # blocks and the duplicated tile of the unconditional 2-way split.
        ti = s * tps + j
        r_idx = jax.lax.broadcasted_iota(jnp.int32, t.shape, 0)
        l_idx = jax.lax.broadcasted_iota(jnp.int32, t.shape, 1)
        pix = (ti * tile_r + r_idx) * 128 + l_idx
        valid = valid & (pix < hw)

    # Mask the final product (keeps any NaN/Inf from out-of-bounds tails out
    # of the sum); alpha is folded into the host-side scalar.
    focal = jnp.where(valid, weight * ce, 0.0)

    # Sublane-aligned fold to (ACC_R, 128): plain VPU adds, no relayout.
    folded = focal.reshape(tile_r // acc_r, acc_r, 128).sum(axis=0)
    out_ref[...] += folded.reshape(1, 1, acc_r, 128)


def _pick_tile_r(r_total, num_classes, itemsize,
                 budget_bytes=8 * 1024 * 1024, n_temps=12):
    """Largest TILE_R (multiple of 8) whose *real* resident set fits the budget.

    Accounts for double-buffered logits, double-buffered int32 targets and the
    in-kernel f32 temporaries — roughly 1-2 MiB per logits buffer for small C,
    well under v5e's 16 MiB and v7x's 32 MiB scoped-VMEM defaults.
    """
    per_row = 2 * num_classes * 128 * itemsize    # double-buffered logits block
    per_row += 2 * 128 * 4                        # double-buffered int32 targets
    per_row += n_temps * 128 * 4                  # in-kernel f32 temporaries
    tile_r = max(8, (budget_bytes // per_row) // 8 * 8)
    if r_total <= tile_r:
        return int(r_total)                       # single tile covers the image
    return int(tile_r)


def focal_loss(inputs, targets, ignore_index, alpha=0.8, gamma=2.0,
               size_average=True, tile_r=None, approx_reciprocal=True):
    """inputs: (N, C, H, W) float (f32/bf16); targets: (N, H, W) int. Scalar."""
    n, c, h, w = inputs.shape
    hw = h * w
    hw_pad = -(-hw // 128) * 128
    r_total = hw_pad // 128

    # Cheap reshapes only (no transpose / upcast in HBM); pad only if H*W is
    # not a multiple of 128 (padded pixels are masked out in-kernel).
    x = inputs.reshape(n, c, hw)
    t = targets.reshape(n, 1, hw).astype(jnp.int32)
    if hw_pad != hw:
        x = jnp.pad(x, ((0, 0), (0, 0), (0, hw_pad - hw)))
        t = jnp.pad(t, ((0, 0), (0, 0), (0, hw_pad - hw)),
                    constant_values=ignore_index)
    x = x.reshape(n, c, r_total, 128)
    t = t.reshape(n, 1, r_total, 128)

    if tile_r is None:
        tile_r = _pick_tile_r(r_total, c, x.dtype.itemsize)
    else:
        tile_r = int(tile_r)
        if tile_r >= r_total:
            tile_r = r_total
        else:
            tile_r = max(8, (tile_r // 8) * 8)    # must be a multiple of 8

    num_tiles = int(pl.cdiv(r_total, tile_r))
    # Unconditional 2-way split whenever there is more than one tile: both v7x
    # TensorCores get work even for n == 1 / odd tile counts; an odd tile
    # count costs at most one duplicated, fully-masked tile.
    nsplit = 2 if num_tiles >= 2 else 1
    tps = int(pl.cdiv(num_tiles, nsplit))
    acc_r = 8 if tile_r % 8 == 0 else tile_r
    # If every logical pixel index covered by the grid is < hw, the pixel-index
    # mask is dead code and is compiled out.
    needs_pix_mask = (nsplit * tps * tile_r * 128 != hw)

    kernel = functools.partial(
        _focal_loss_kernel,
        gamma=float(gamma), ignore_index=int(ignore_index), hw=int(hw),
        tile_r=tile_r, tps=tps, acc_r=acc_r,
        needs_pix_mask=bool(needs_pix_mask),
        approx_recip=bool(approx_reciprocal),
    )

    def in_map(b, s, j):
        # Clamp to the last valid block; duplicated tiles are masked in-kernel
        # via the logical pixel index.
        return (b, 0, jnp.minimum(s * tps + j, num_tiles - 1), 0)

    partials = pl.pallas_call(
        kernel,
        out_shape=jax.ShapeDtypeStruct((n, nsplit, acc_r, 128), jnp.float32),
        grid_spec=pltpu.PrefetchScalarGridSpec(
            num_scalar_prefetch=0,
            grid=(n, nsplit, tps),
            in_specs=[
                pl.BlockSpec((1, c, tile_r, 128), in_map),
                pl.BlockSpec((1, 1, tile_r, 128), in_map),
            ],
            out_specs=pl.BlockSpec((1, 1, acc_r, 128),
                                   lambda b, s, j: (b, s, 0, 0)),
        ),
        compiler_params=pltpu.CompilerParams(
            dimension_semantics=("parallel", "parallel", "arbitrary")),
    )(x, t)

    # alpha folded into the final scalar (dropped from the per-pixel chain).
    total = float(alpha) * jnp.sum(partials)
    if size_average:
        return total / (n * hw)
    return total


def _reference(inputs, targets, ignore_index, alpha, gamma, size_average):
    """Pure-JAX reference matching PyTorch semantics."""
    logits = jnp.transpose(inputs, (0, 2, 3, 1)).astype(jnp.float32)
    logp = jax.nn.log_softmax(logits, axis=-1)
    valid = targets != ignore_index
    safe_t = jnp.where(valid, targets, 0)
    ce = -jnp.take_along_axis(logp, safe_t[..., None], axis=-1)[..., 0]
    ce = jnp.where(valid, ce, 0.0)
    pt = jnp.exp(-ce)
    fl = alpha * (1.0 - pt) ** gamma * ce
    return fl.mean() if size_average else fl.sum()


if __name__ == "__main__":
    IGNORE_INDEX = 255
    ALPHA, GAMMA = 0.8, 2.0

    # --- case 1: module-sized shapes (N=2, C=4, H=W=16), mean reduction ------
    k_x, k_t, k_m = jax.random.split(jax.random.PRNGKey(0), 3)
    inputs = jax.random.normal(k_x, (2, 4, 16, 16), dtype=jnp.float32)
    targets = jax.random.randint(k_t, (2, 16, 16), 0, 4, dtype=jnp.int32)
    targets = jnp.where(jax.random.bernoulli(k_m, 0.1, (2, 16, 16)),
                        IGNORE_INDEX, targets)
    ref = _reference(inputs, targets, IGNORE_INDEX, ALPHA, GAMMA, True)

    # Exact-reciprocal path: strict check against the reference.
    loss_exact = jax.block_until_ready(
        focal_loss(inputs, targets, IGNORE_INDEX, ALPHA, GAMMA,
                   size_average=True, approx_reciprocal=False))
    assert jnp.allclose(loss_exact, ref, rtol=1e-5, atol=1e-6), (loss_exact, ref)

    # Default perf path (EUP approx reciprocal): sanity check, looser tol.
    loss_approx = jax.block_until_ready(
        focal_loss(inputs, targets, IGNORE_INDEX, ALPHA, GAMMA,
                   size_average=True))
    assert jnp.allclose(loss_approx, ref, rtol=5e-2, atol=5e-3), (loss_approx, ref)

    # --- case 2: odd tile count -> clamped duplicate tile (split path), sum --
    k_x, k_t = jax.random.split(jax.random.PRNGKey(1))
    x2 = jax.random.normal(k_x, (1, 3, 17, 128), dtype=jnp.float32)
    t2 = jax.random.randint(k_t, (1, 17, 128), 0, 3, dtype=jnp.int32)
    loss2 = jax.block_until_ready(
        focal_loss(x2, t2, IGNORE_INDEX, ALPHA, GAMMA, size_average=False,
                   tile_r=8, approx_reciprocal=False))
    ref2 = _reference(x2, t2, IGNORE_INDEX, ALPHA, GAMMA, False)
    assert jnp.allclose(loss2, ref2, rtol=1e-5, atol=1e-5), (loss2, ref2)

    # --- case 3: H*W not a multiple of 128 (padded tail), sum reduction ------
    k_x, k_t, k_m = jax.random.split(jax.random.PRNGKey(2), 3)
    x3 = jax.random.normal(k_x, (2, 4, 12, 20), dtype=jnp.float32)
    t3 = jax.random.randint(k_t, (2, 12, 20), 0, 4, dtype=jnp.int32)
    t3 = jnp.where(jax.random.bernoulli(k_m, 0.2, (2, 12, 20)),
                   IGNORE_INDEX, t3)
    loss3 = jax.block_until_ready(
        focal_loss(x3, t3, IGNORE_INDEX, ALPHA, GAMMA, size_average=False,
                   approx_reciprocal=False))
    ref3 = _reference(x3, t3, IGNORE_INDEX, ALPHA, GAMMA, False)
    assert jnp.allclose(loss3, ref3, rtol=1e-5, atol=1e-5), (loss3, ref3)

    print("KERNEL_OK")
</pallas_src>

<mosaic_0001>
module attributes {stable_mosaic.version = 11 : i64} {
  func.func @_focal_loss_kernel(%arg0: i32, %arg1: i32, %arg2: i32, %arg3: memref<1x4x2x128xf32, #tpu.memory_space<vmem>>, %arg4: memref<1x1x2x128xi32, #tpu.memory_space<vmem>>, %arg5: memref<1x1x2x128xf32, #tpu.memory_space<vmem>>) attributes {dimension_semantics = [#tpu.dimension_semantics<parallel>, #tpu.dimension_semantics<parallel>, #tpu.dimension_semantics<arbitrary>], iteration_bounds = array<i64: 2, 1, 1>, scalar_prefetch = 0 : i64, scratch_operands = 0 : i64, tpu.core_type = #tpu.core_type<tc>, window_params = [{transform_indices = @transform_0, window_bounds = array<i64: 1, 4, 2, 128>}, {transform_indices = @transform_1, window_bounds = array<i64: 1, 1, 2, 128>}, {transform_indices = @transform_2, window_bounds = array<i64: 1, 1, 2, 128>}]} {
    %c0_i32 = arith.constant 0 : i32
    %0 = arith.cmpi eq, %arg2, %c0_i32 : i32
    %1 = arith.extui %0 : i1 to i32
    %c0_i32_0 = arith.constant 0 : i32
    %2 = arith.cmpi ne, %1, %c0_i32_0 : i32
    scf.if %2 {
      %cst_47 = arith.constant 0.000000e+00 : f32
      %74 = vector.broadcast %cst_47 : f32 to vector<1x1x2x128xf32>
      %c0_48 = arith.constant 0 : index
      %c0_49 = arith.constant 0 : index
      %c0_50 = arith.constant 0 : index
      %c0_51 = arith.constant 0 : index
      %75 = vector.load %arg5[%c0_48, %c0_49, %c0_50, %c0_51] : memref<1x1x2x128xf32, #tpu.memory_space<vmem>>, vector<1x1x2x128xf32>
      tpu.vector_store %arg5[%c0_48, %c0_49, %c0_50, %c0_51], %74 {strides = array<i32>} : memref<1x1x2x128xf32, #tpu.memory_space<vmem>>, vector<1x1x2x128xf32>,
    } else {
    }
    %c0 = arith.constant 0 : index
    %c0_1 = arith.constant 0 : index
    %c0_2 = arith.constant 0 : index
    %c0_3 = arith.constant 0 : index
    %3 = vector.load %arg4[%c0, %c0_1, %c0_2, %c0_3] : memref<1x1x2x128xi32, #tpu.memory_space<vmem>>, vector<1x1x2x128xi32>
    %4 = vector.shape_cast %3 : vector<1x1x2x128xi32> to vector<2x128xi32>
    %c0_4 = arith.constant 0 : index
    %c0_5 = arith.constant 0 : index
    %c0_6 = arith.constant 0 : index
    %c0_7 = arith.constant 0 : index
    %5 = vector.load %arg3[%c0_4, %c0_5, %c0_6, %c0_7] : memref<1x4x2x128xf32, #tpu.memory_space<vmem>>, vector<1x1x2x128xf32>
    %6 = vector.shape_cast %5 : vector<1x1x2x128xf32> to vector<2x128xf32>
    %c0_8 = arith.constant 0 : index
    %c1 = arith.constant 1 : index
    %c0_9 = arith.constant 0 : index
    %c0_10 = arith.constant 0 : index
    %7 = vector.load %arg3[%c0_8, %c1, %c0_9, %c0_10] : memref<1x4x2x128xf32, #tpu.memory_space<vmem>>, vector<1x1x2x128xf32>
    %8 = vector.shape_cast %7 : vector<1x1x2x128xf32> to vector<2x128xf32>
    %9 = arith.maximumf %6, %8 : vector<2x128xf32>
    %c0_11 = arith.constant 0 : index
    %c2 = arith.constant 2 : index
    %c0_12 = arith.constant 0 : index
    %c0_13 = arith.constant 0 : index
    %10 = vector.load %arg3[%c0_11, %c2, %c0_12, %c0_13] : memref<1x4x2x128xf32, #tpu.memory_space<vmem>>, vector<1x1x2x128xf32>
    %11 = vector.shape_cast %10 : vector<1x1x2x128xf32> to vector<2x128xf32>
    %12 = arith.maximumf %9, %11 : vector<2x128xf32>
    %c0_14 = arith.constant 0 : index
    %c3 = arith.constant 3 : index
    %c0_15 = arith.constant 0 : index
    %c0_16 = arith.constant 0 : index
    %13 = vector.load %arg3[%c0_14, %c3, %c0_15, %c0_16] : memref<1x4x2x128xf32, #tpu.memory_space<vmem>>, vector<1x1x2x128xf32>
    %14 = vector.shape_cast %13 : vector<1x1x2x128xf32> to vector<2x128xf32>
    %15 = arith.maximumf %12, %14 : vector<2x128xf32>
    %cst = arith.constant 0.000000e+00 : f32
    %16 = vector.broadcast %cst : f32 to vector<2x128xf32>
    %cst_17 = arith.constant 0.000000e+00 : f32
    %17 = vector.broadcast %cst_17 : f32 to vector<2x128xf32>
    %cst_18 = arith.constant 0.000000e+00 : f32
    %18 = vector.broadcast %cst_18 : f32 to vector<2x128xf32>
    %c0_19 = arith.constant 0 : index
    %c0_20 = arith.constant 0 : index
    %c0_21 = arith.constant 0 : index
    %c0_22 = arith.constant 0 : index
    %19 = vector.load %arg3[%c0_19, %c0_20, %c0_21, %c0_22] : memref<1x4x2x128xf32, #tpu.memory_space<vmem>>, vector<1x1x2x128xf32>
    %20 = vector.shape_cast %19 : vector<1x1x2x128xf32> to vector<2x128xf32>
    %21 = arith.subf %20, %15 : vector<2x128xf32>
    %22 = math.exp %21 : vector<2x128xf32>
    %23 = arith.addf %16, %22 : vector<2x128xf32>
    %c0_i32_23 = arith.constant 0 : i32
    %24 = vector.broadcast %c0_i32_23 : i32 to vector<2x128xi32>
    %25 = arith.cmpi eq, %4, %24 : vector<2x128xi32>
    %26 = arith.select %25, %22, %17 : vector<2x128xi1>, vector<2x128xf32>
    %27 = arith.select %25, %20, %18 : vector<2x128xi1>, vector<2x128xf32>
    %c0_24 = arith.constant 0 : index
    %c1_25 = arith.constant 1 : index
    %c0_26 = arith.constant 0 : index
    %c0_27 = arith.constant 0 : index
    %28 = vector.load %arg3[%c0_24, %c1_25, %c0_26, %c0_27] : memref<1x4x2x128xf32, #tpu.memory_space<vmem>>, vector<1x1x2x128xf32>
    %29 = vector.shape_cast %28 : vector<1x1x2x128xf32> to vector<2x128xf32>
    %30 = arith.subf %29, %15 : vector<2x128xf32>
    %31 = math.exp %30 : vector<2x128xf32>
    %32 = arith.addf %23, %31 : vector<2x128xf32>
    %c1_i32 = arith.constant 1 : i32
    %33 = vector.broadcast %c1_i32 : i32 to vector<2x128xi32>
    %34 = arith.cmpi eq, %4, %33 : vector<2x128xi32>
    %35 = arith.select %34, %31, %26 : vector<2x128xi1>, vector<2x128xf32>
    %36 = arith.select %34, %29, %27 : vector<2x128xi1>, vector<2x128xf32>
    %c0_28 = arith.constant 0 : index
    %c2_29 = arith.constant 2 : index
    %c0_30 = arith.constant 0 : index
    %c0_31 = arith.constant 0 : index
    %37 = vector.load %arg3[%c0_28, %c2_29, %c0_30, %c0_31] : memref<1x4x2x128xf32, #tpu.memory_space<vmem>>, vector<1x1x2x128xf32>
    %38 = vector.shape_cast %37 : vector<1x1x2x128xf32> to vector<2x128xf32>
    %39 = arith.subf %38, %15 : vector<2x128xf32>
    %40 = math.exp %39 : vector<2x128xf32>
    %41 = arith.addf %32, %40 : vector<2x128xf32>
    %c2_i32 = arith.constant 2 : i32
    %42 = vector.broadcast %c2_i32 : i32 to vector<2x128xi32>
    %43 = arith.cmpi eq, %4, %42 : vector<2x128xi32>
    %44 = arith.select %43, %40, %35 : vector<2x128xi1>, vector<2x128xf32>
    %45 = arith.select %43, %38, %36 : vector<2x128xi1>, vector<2x128xf32>
    %c0_32 = arith.constant 0 : index
    %c3_33 = arith.constant 3 : index
    %c0_34 = arith.constant 0 : index
    %c0_35 = arith.constant 0 : index
    %46 = vector.load %arg3[%c0_32, %c3_33, %c0_34, %c0_35] : memref<1x4x2x128xf32, #tpu.memory_space<vmem>>, vector<1x1x2x128xf32>
    %47 = vector.shape_cast %46 : vector<1x1x2x128xf32> to vector<2x128xf32>
    %48 = arith.subf %47, %15 : vector<2x128xf32>
    %49 = math.exp %48 : vector<2x128xf32>
    %50 = arith.addf %41, %49 : vector<2x128xf32>
    %c3_i32 = arith.constant 3 : i32
    %51 = vector.broadcast %c3_i32 : i32 to vector<2x128xi32>
    %52 = arith.cmpi eq, %4, %51 : vector<2x128xi32>
    %53 = arith.select %52, %49, %44 : vector<2x128xi1>, vector<2x128xf32>
    %54 = arith.select %52, %47, %45 : vector<2x128xi1>, vector<2x128xf32>
    %55 = math.log %50 : vector<2x128xf32>
    %56 = arith.addf %55, %15 : vector<2x128xf32>
    %57 = arith.subf %56, %54 : vector<2x128xf32>
    %58 = tpu.reciprocal %50 : vector<2x128xf32> -> vector<2x128xf32>
    %59 = arith.mulf %53, %58 : vector<2x128xf32>
    %cst_36 = arith.constant 1.000000e+00 : f32
    %60 = vector.broadcast %cst_36 : f32 to vector<2x128xf32>
    %61 = arith.subf %60, %59 : vector<2x128xf32>
    %62 = arith.mulf %61, %61 : vector<2x128xf32>
    %c255_i32 = arith.constant 255 : i32
    %63 = vector.broadcast %c255_i32 : i32 to vector<2x128xi32>
    %64 = arith.cmpi ne, %4, %63 : vector<2x128xi32>
    %65 = arith.mulf %62, %57 : vector<2x128xf32>
    %cst_37 = arith.constant 0.000000e+00 : f32
    %66 = vector.broadcast %cst_37 : f32 to vector<2x128xf32>
    %67 = arith.select %64, %65, %66 : vector<2x128xi1>, vector<2x128xf32>
    %68 = vector.shape_cast %67 : vector<2x128xf32> to vector<1x2x128xf32>
    %cst_38 = arith.constant dense<0.000000e+00> : vector<2x128xf32>
    %69 = vector.multi_reduction <add>, %68, %cst_38 [0] : vector<1x2x128xf32> to vector<2x128xf32>
    %c0_39 = arith.constant 0 : index
    %c0_40 = arith.constant 0 : index
    %c0_41 = arith.constant 0 : index
    %c0_42 = arith.constant 0 : index
    %70 = vector.load %arg5[%c0_39, %c0_40, %c0_41, %c0_42] : memref<1x1x2x128xf32, #tpu.memory_space<vmem>>, vector<1x1x2x128xf32>
    %71 = vector.shape_cast %69 : vector<2x128xf32> to vector<1x1x2x128xf32>
    %72 = arith.addf %70, %71 : vector<1x1x2x128xf32>
    %c0_43 = arith.constant 0 : index
    %c0_44 = arith.constant 0 : index
    %c0_45 = arith.constant 0 : index
    %c0_46 = arith.constant 0 : index
    %73 = vector.load %arg5[%c0_43, %c0_44, %c0_45, %c0_46] : memref<1x1x2x128xf32, #tpu.memory_space<vmem>>, vector<1x1x2x128xf32>
    tpu.vector_store %arg5[%c0_43, %c0_44, %c0_45, %c0_46], %72 {strides = array<i32>} : memref<1x1x2x128xf32, #tpu.memory_space<vmem>>, vector<1x1x2x128xf32>,
    return
  }
  func.func @transform_0(%arg0: i32, %arg1: i32, %arg2: i32) -> (i32, i32, i32, i32) {
    %c1_i32 = arith.constant 1 : i32
    %0 = arith.muli %arg1, %c1_i32 : i32
    %1 = arith.addi %0, %arg2 : i32
    %c0_i32 = arith.constant 0 : i32
    %2 = arith.minsi %1, %c0_i32 : i32
    %c0_i32_0 = arith.constant 0 : i32
    %c0_i32_1 = arith.constant 0 : i32
    %c0_i32_2 = arith.constant 0 : i32
    return %arg0, %c0_i32_0, %2, %c0_i32_1 : i32, i32, i32, i32
  }
  func.func @transform_1(%arg0: i32, %arg1: i32, %arg2: i32) -> (i32, i32, i32, i32) {
    %c1_i32 = arith.constant 1 : i32
    %0 = arith.muli %arg1, %c1_i32 : i32
    %1 = arith.addi %0, %arg2 : i32
    %c0_i32 = arith.constant 0 : i32
    %2 = arith.minsi %1, %c0_i32 : i32
    %c0_i32_0 = arith.constant 0 : i32
    %c0_i32_1 = arith.constant 0 : i32
    %c0_i32_2 = arith.constant 0 : i32
    return %arg0, %c0_i32_0, %2, %c0_i32_1 : i32, i32, i32, i32
  }
  func.func @transform_2(%arg0: i32, %arg1: i32, %arg2: i32) -> (i32, i32, i32, i32) {
    %c0_i32 = arith.constant 0 : i32
    %c0_i32_0 = arith.constant 0 : i32
    %c0_i32_1 = arith.constant 0 : i32
    return %arg0, %arg1, %c0_i32, %c0_i32_0 : i32, i32, i32, i32
  }
}

</mosaic_0001>

<bundles_post_ra>
// kernel: tpu_custom_call.1
= control target key start
LH: loop header
LB: loop body
LE: loop exit
PB: predicated region body
PF: predicated region fallthrough
CT: control target
= control target key end

     0   :  { %7 = vsyncpa [#allocation3], 0  ;;  %s925_s0 = inlined_call_operand.hbm [shape: f32[2,4,2,128], index: 0, kind: input, shape index: {}]   ;;  %s926_s1 = inlined_call_operand.hbm [shape: s32[2,1,2,128], index: 1, kind: input, shape index: {}]   ;;  %s927_s2 = inlined_call_operand.hbm [shape: f32[2,1,2,128], index: 2, kind: output, shape index: {}]  }
   0x1   :  { %9 = vsyncpa [#allocation3 + $0x1], 0 }
   0x2   :  { %10 = vsyncpa [#allocation6], 0 }
   0x3   :  { %12 = vsyncpa [#allocation6 + $0x1], 0 }
   0x4   :  { %13 = vsyncpa [#allocation4], 0 }
   0x5   :  { %15 = vsyncpa [#allocation4 + $0x1], 0  ;;  %s704_s9 = smov 0   ;;  %s706_s10 = smov 0  }
   0x6   :  { %s708_s11 = smov 0   ;;  %s710_s12 = smov 0  }
   0x7   :  { %s712_s13 = smov 0   ;;  %s714_s14 = smov 0  }
   0x8 LB: > { %s432_s15 = sadd.s32 4294967295, %s681_s14   ;;  %s433_s16 = sadd.s32 4294967294, %s681_s14   ;;  %s681_s14 = sphi %s714_s14, %s21_s14   ;;  %s677_s13 = sphi %s712_s13, %s946_s13   ;;  %s673_s12 = sphi %s710_s12, %s945_s12   ;;  %s669_s11 = sphi %s708_s11, %s944_s11   ;;  %s665_s10 = sphi %s706_s10, %s943_s10   ;;  %s661_s9 = sphi %s704_s9, %s942_s9  }
   0x9   : > { %s40_s17 = sadd.s32 1, %s677_s13  ;;  %s55_s18 = sadd.s32 1, %s669_s11 }
   0xa   : > { %p42_p0 = scmp.ge.s32.totalorder %s40_s17, 2  ;;  %p62_p1 = scmp.ne.s32.totalorder %s669_s11, %s665_s10 }
   0xb   : > { %p63_p2 = scmp.eq.s32.totalorder %s681_s14, 0  ;;  %p68_p3 = scmp.ne.s32.totalorder %s665_s10, %s661_s9 }
   0xc   : > { %s948_s17 = smov (%p42_p0, %s40_s17), 0  ;;  %p69_p5 = scmp.eq.s32.totalorder %s432_s15, 0 }
   0xd   : > { %p745_p4 = por %p63_p2, %p62_p1  ;;  %s50_s20 = ssub.s32 %s677_s13, %s948_s17 }
   0xe   : > { %p128_p6 = scmp.eq.s32.totalorder %s432_s15, 1  ;;  %p53_p7 = scmp.eq.s32.totalorder %s50_s20, 0 }
   0xf   : > { %p751_p8 = por %p69_p5, %p68_p3  ;;  %p134_p10 = scmp.eq.s32.totalorder %s433_s16, 1 }
  0x10   : > { %p755_p9 = por %p128_p6, %p62_p1  ;;  %p470_p13 = scmp.lt.s32.totalorder %s681_s14, 2 }
  0x11   : > { %s931_s21 = scalar_select %p751_p8, 1, 0 }
  0x12   : > { %s932_s22 = scalar_select %p755_p9, 1, 0 }
  0x13   : > { %s760_s23 = scalar_select %p53_p7, %s669_s11, %s55_s18  }
  0x14   : > { %p762_p11 = por %p134_p10, %p68_p3  ;;  %s769_s25 = sand.u32 1, %s669_s11  }
  0x15   : > { %s436_s26 = sshll.u32 %s769_s25, 3  ;;  %s452_s27 = sshll.u32 %s677_s13, 7 }
  0x16   : > { %s933_s24 = scalar_select %p762_p11, 1, 0 }
  0x17   : > { %s776_s30 = scalar_lea.hbm %s925_s0, %s452_s27  ;;  %s158_s3 = scalar_lea.vmem [#allocation2], %s436_s26 }
  0x18   : > { %s169_s4 = sshll.u32 %s158_s3, 4  ;;  %p782_p0 = pnand %p470_p13, %p745_p4  ;;  %s778_s4 = int_to_ptr.vmem [resolvable:$true] %s169_s4 }
  0x19   : > { %s155_s6 = scalar_lea.sflag [#allocation3], %s769_s25  ;;  %s535_s7 = scalar_lea.hbm %s776_s30, 128 }
  0x1a   : > { %p536_p2 = scmp.ne.s32.totalorder %s776_s30, %s535_s7  ;;  %p537_p3 = pneg %p782_p0 }
  0x1b   : > { %s540_s16 = scalar_lea.hbm %s925_s0, 256  ;;  %p541_p4 = scmp.lt.u32.totalorder %s776_s30, %s925_s0 }
  0x1c   : > { %p538_p5 = pnand %p537_p3, %p536_p2  ;;  %p542_p7 = scmp.lt.u32.totalorder %s540_s16, %s535_s7 }
  0x1d   : > { %p544_p13 = scmp.lt.u32.totalorder %s535_s7, %s776_s30 }
  0x1e   : > { %p539_p6 = pneg %p538_p5  ;;  %p543_p10 = por %p542_p7, %p541_p4 }
  0x20   : > { %p545_p12 = por %p544_p13, %p543_p10 }
  0x22   : > { %p546_p1 = pnand %p545_p12, %p539_p6 }
  0x24   : > { %549 = shalt.err (!%p546_p1)
}
  0x25   : > { %s550_s20 = scalar_lea.vmem %s778_s4, 128  ;;  %s683_s26 = smov [#allocation2]  }
  0x26   : > { %p551_p2 = scmp.ne.s32.totalorder %s778_s4, %s550_s20  ;;  %s555_s27 = sshll.u32 %s683_s26, 4  ;;  %s556_s27 = int_to_ptr.vmem [resolvable:$false] %s555_s27 }
  0x27   : > { %s557_s28 = scalar_lea.vmem %s556_s27, 256  ;;  %p558_p9 = scmp.lt.s32.totalorder %s778_s4, %s556_s27 }
  0x28   : > { %p553_p5 = pnand %p551_p2, %p537_p3  ;;  %p559_p4 = scmp.lt.s32.totalorder %s557_s28, %s550_s20 }
  0x2a   : > { %p554_p11 = pneg %p553_p5  ;;  %p560_p7 = por %p559_p4, %p558_p9 }
  0x2c   : > { %p561_p10 = pnand %p560_p7, %p554_p11 }
  0x2e   : > { %564 = shalt.err (!%p561_p10)
}
  0x2f   : > { %s684_s29 = smov 32   ;;  %s685_s3 = smov 2  }
  0x30   : > { %462 = dma.hbm_to_vmem [thread:$0]  (!%p782_p0), %s776_s30, 128, %s778_s4, %s155_s6, %s684_s29, %s684_s29, %s685_s3  }
  0x31   : > { %p199_p12 = scmp.lt.s32.totalorder %s681_s14, 3  ;;  %s439_s7 = sshll.u32 %s769_s25, 1 }
  0x32   : > { %s440_s8 = sshll.u32 %s677_s13, 5  ;;  %p935_p9 = scmp.ge.s32.totalorder %s681_s14, 1 }
  0x33   : > { %s827_s19 = scalar_lea.hbm %s926_s1, %s440_s8  ;;  %s183_s20 = scalar_lea.vmem [#allocation5], %s439_s7 }
  0x34   : > { %p820_p11 = pnand %p935_p9, %p199_p12  ;;  %s194_s26 = sshll.u32 %s183_s20, 4  ;;  %s195_s26 = int_to_ptr.vmem [resolvable:$true] %s194_s26 }
  0x35   : > { %s180_s30 = scalar_lea.sflag [#allocation6], %s769_s25  ;;  %s565_s4 = scalar_lea.hbm %s827_s19, 32 }
  0x36   : > { %s936_s15 = scalar_select %p820_p11, 1, 0 }
  0x37   : > { %p566_p1 = scmp.ne.s32.totalorder %s827_s19, %s565_s4  ;;  %s570_s28 = scalar_lea.hbm %s926_s1, 64 }
  0x38   : > { %p571_p2 = scmp.lt.u32.totalorder %s827_s19, %s926_s1  ;;  %p572_p5 = scmp.lt.u32.totalorder %s570_s28, %s565_s4 }
  0x39   : > { %p568_p6 = pnand %p566_p1, %p537_p3  ;;  %p574_p7 = scmp.lt.u32.totalorder %s565_s4, %s827_s19 }
  0x3a   : > { %p573_p4 = por %p572_p5, %p571_p2 }
  0x3b   : > { %p569_p13 = pneg %p568_p6 }
  0x3c   : > { %p575_p10 = por %p574_p7, %p573_p4 }
  0x3e   : > { %p576_p12 = pnand %p575_p10, %p569_p13 }
  0x40   : > { %579 = shalt.err (!%p576_p12)
}
  0x41   : > { %s580_s25 = scalar_lea.vmem %s195_s26, 32  ;;  %s686_s7 = smov [#allocation5]  }
  0x42   : > { %p581_p9 = scmp.ne.s32.totalorder %s195_s26, %s580_s25  ;;  %s585_s8 = sshll.u32 %s686_s7, 4  ;;  %s586_s8 = int_to_ptr.vmem [resolvable:$false] %s585_s8 }
  0x43   : > { %s587_s16 = scalar_lea.vmem %s586_s8, 64  ;;  %p588_p8 = scmp.lt.s32.totalorder %s195_s26, %s586_s8 }
  0x44   : > { %p583_p1 = pnand %p581_p9, %p537_p3  ;;  %p589_p11 = scmp.lt.s32.totalorder %s587_s16, %s580_s25 }
  0x46   : > { %p584_p6 = pneg %p583_p1  ;;  %p590_p2 = por %p589_p11, %p588_p8 }
  0x48   : > { %p591_p5 = pnand %p590_p2, %p584_p6 }
  0x4a   : > { %594 = shalt.err (!%p591_p5)
}
  0x4b   : > { %465 = dma.hbm_to_vmem [thread:$0]  (!%p782_p0), %s827_s19, 32, %s195_s26, %s180_s30  }
  0x4c   : > { %p937_p13 = scmp.ne.s32.totalorder %s936_s15, 0 }
  0x4d   : > { %s852_s18 = sand.u32 (!%p937_p13), 1, %s665_s10   ;;  %p938_p3 = scmp.ne.s32.totalorder (!%p937_p13), %s931_s21, 0 }
  0x4e   : > { %203 = sbr.rel (%p937_p13) target bundleno = 156 (0x9c), region = 28  ;;  %s442_s20 = sshll.u32 (!%p937_p13), %s852_s18, 3 }
  0x4f   : > { %s206_s4 = scalar_lea.sflag (!%p937_p13), [#allocation3], %s852_s18  ;;  %s209_s6 = scalar_lea.vmem (!%p937_p13), [#allocation2], %s442_s20 }
  0x55   : > { %648 = dma.done.wait (%p938_p3), %s206_s4, 128  }
  0x56   : > { %650 = vsyncadd (%p938_p3), %s206_s4, 4294967168  ;;  %s443_s5 = sshll.u32 %s852_s18, 1  ;;  %s215_s15 = scalar_lea.sflag [#allocation6], %s852_s18 }
  0x57   : > { %s218_s19 = scalar_lea.vmem [#allocation5], %s443_s5 }
  0x58   : > { %652 = dma.done.wait (%p938_p3), %s215_s15, 32  }
  0x59   : > { %654 = vsyncadd (%p938_p3), %s215_s15, 4294967264  ;;  %s866_s26 = scalar_lea.vmem [#allocation7], %s443_s5  ;;  %v687_v0 = vmov 0.0   ;;  %v256_v1 = vld [vmem:[%s209_s6] sm:$0x3]  ;;  %s449_s21 = sshll.u32 %s673_s12, 5 }
  0x5a   : > { %254 = vst [vmem:[%s866_s26] sm:$0x3] %v687_v0  ;;  %v445_v2 = vld [vmem:[%s209_s6 + $0x2] sm:$0x3]  ;;  %v446_v4 = vld [vmem:[%s209_s6 + $0x4] sm:$0x3]  ;;  %s324_s30 = sshll.u32 %s866_s26, 4  ;;  %s875_s29 = scalar_lea.hbm %s927_s2, %s449_s21  ;;  %s877_s30 = int_to_ptr.vmem [resolvable:$true] %s324_s30 }
  0x5b   : > { %v259_v3 = vmax.f32 %v256_v1, %v445_v2  ;;  %v447_v5 = vld [vmem:[%s209_s6 + $0x6] sm:$0x3]  ;;  %v255_v19 = vld [vmem:[%s218_s19] sm:$0x3]  ;;  %s310_s3 = scalar_lea.sflag [#allocation4], %s852_s18  ;;  %s595_s25 = scalar_lea.vmem %s877_s30, 32 }
  0x5c   : > { %vm270_vm0 = vcmp.eq.s32.totalorder %v255_v19, 0  ;;  %vm277_vm1 = vcmp.eq.s32.totalorder %v255_v19, 1  ;;  %vm284_vm2 = vcmp.eq.s32.totalorder %v255_v19, 2  ;;  %vm291_vm3 = vcmp.eq.s32.totalorder %v255_v19, 3  ;;  %p596_p8 = scmp.ne.s32.totalorder %s877_s30, %s595_s25  ;;  %p939_p0 = scmp.ne.s32.totalorder %s932_s22, 0 }
  0x5d   : > { %v262_v6 = vmax.f32 %v259_v3, %v446_v4  ;;  %v272_v25 = vsel %vm270_vm0, %v256_v1, 0.0  ;;  %vm302_vm4 = vcmp.ne.s32.totalorder %v255_v19, 255  ;;  %s688_s12 = smov [#allocation7]  }
  0x5e   : > { %v279_v27 = vsel %vm277_vm1, %v445_v2, %v272_v25  ;;  %p597_p11 = pnand %p596_p8, %p939_p0  ;;  %s599_s7 = sshll.u32 %s688_s12, 4  ;;  %s600_s7 = int_to_ptr.vmem [resolvable:$false] %s599_s7 }
  0x5f   : > { %v265_v7 = vmax.f32 %v262_v6, %v447_v5  ;;  %v286_v29 = vsel %vm284_vm2, %v446_v4, %v279_v27  ;;  %s601_s8 = scalar_lea.vmem %s600_s7, 64  ;;  %p602_p7 = scmp.lt.s32.totalorder %s877_s30, %s600_s7 }
  0x60   : > { %v293_v34 = vsel %vm291_vm3, %v447_v5, %v286_v29  ;;  %p598_p4 = pneg %p597_p11  ;;  %p603_p10 = scmp.lt.s32.totalorder %s601_s8, %s595_s25 }
  0x61   : > { %v266_v8 = vsub.f32 %v256_v1, %v265_v7  ;;  %v273_v9 = vsub.f32 %v445_v2, %v265_v7  ;;  %v280_v10 = vsub.f32 %v446_v4, %v265_v7  ;;  %v287_v11 = vsub.f32 %v447_v5, %v265_v7  ;;  %v306_v41 = vld [vmem:[%s866_s26] sm:$0x3] }
  0x62   : > { %p604_p12 = por %p603_p10, %p602_p7 }
  0x63   : > { %v267_v12 = vmul.f32 1.442695, %v266_v8  ;;  %v274_v13 = vmul.f32 1.442695, %v273_v9  ;;  %v281_v14 = vmul.f32 1.442695, %v280_v10 }
  0x64   : > { %v288_v15 = vmul.f32 1.442695, %v287_v11  ;;  %p605_p9 = pnand %p604_p12, %p598_p4 }
  0x65   : > { %523 = vpow2.f32 %v267_v12 }
  0x66   : > { %525 = vpow2.f32 %v274_v13 }
  0x67   : > { %527 = vpow2.f32 %v281_v14 }
  0x68   : > { %529 = vpow2.f32 %v288_v15 }
  0x6f   : > { %v524_v16 = vpop.eup %523 }
  0x70   : > { %v526_v17 = vpop.eup %525  ;;  %v271_v24 = vsel %vm270_vm0, %v524_v16, 0.0 }
  0x71   : > { %v528_v18 = vpop.eup %527  ;;  %v276_v20 = vadd.f32 %v526_v17, %v524_v16  ;;  %v278_v26 = vsel %vm277_vm1, %v526_v17, %v271_v24 }
  0x72   : > { %v530_v21 = vpop.eup %529  ;;  %v285_v28 = vsel %vm284_vm2, %v528_v18, %v278_v26 }
  0x73   : > { %v283_v22 = vadd.f32 %v528_v18, %v276_v20  ;;  %v292_v30 = vsel %vm291_vm3, %v530_v21, %v285_v28 }
  0x75   : > { %v290_v23 = vadd.f32 %v530_v21, %v283_v22 }
  0x77   : > { %531 = vlog2.f32 %v290_v23 }
  0x78   : > { %533 = vrcp.f32 %v290_v23 }
  0x81   : > { %v532_v31 = vpop.eup %531 }
  0x82   : > { %v534_v32 = vpop.eup %533  ;;  %v295_v33 = vmul.f32 0.6931472, %v532_v31 }
  0x83   : > { %v299_v35 = vmul.f32 %v534_v32, %v292_v30 }
  0x84   : > { %v296_v36 = vadd.f32 %v295_v33, %v265_v7 }
  0x85   : > { %v300_v37 = vsub.f32 1.0, %v299_v35 }
  0x86   : > { %v297_v38 = vsub.f32 %v296_v36, %v293_v34 }
  0x87   : > { %v301_v39 = vmul.f32 %v300_v37, %v300_v37 }
  0x89   : > { %v303_v40 = vmul.f32 %v301_v39, %v297_v38 }
  0x8b   : > { %v304_v42 = vsel %vm302_vm4, %v303_v40, 0.0 }
  0x8c   : > { %v307_v43 = vadd.f32 %v306_v41, %v304_v42 }
  0x8e   : > { %308 = vst [vmem:[%s866_s26] sm:$0x3] %v307_v43 }
  0x8f   : > { %608 = shalt.err (!%p605_p9)
}
  0x90   : > { %s609_s16 = scalar_lea.hbm %s875_s29, 32  ;;  %s613_s4 = scalar_lea.hbm %s927_s2, 64 }
  0x91   : > { %p610_p1 = scmp.ne.s32.totalorder %s875_s29, %s609_s16  ;;  %p614_p5 = scmp.lt.u32.totalorder %s875_s29, %s927_s2 }
  0x92   : > { %p615_p13 = scmp.lt.u32.totalorder %s613_s4, %s609_s16  ;;  %p617_p8 = scmp.lt.u32.totalorder %s609_s16, %s875_s29 }
  0x93   : > { %p611_p6 = pnand %p610_p1, %p939_p0 }
  0x94   : > { %p616_p3 = por %p615_p13, %p614_p5 }
  0x95   : > { %p612_p2 = pneg %p611_p6 }
  0x96   : > { %p618_p11 = por %p617_p8, %p616_p3 }
  0x98   : > { %p619_p4 = pnand %p618_p11, %p612_p2 }
  0x9a   : > { %622 = shalt.err (!%p619_p4)
}
  0x9b   : > { %457 = dma.vmem_to_hbm [thread:$0]  (%p939_p0), %s877_s30, 32, %s875_s29, %s310_s3  }
  0x9c PF: > { %s336_s15 = sand.u32 1, %s661_s9   ;;  %p940_p7 = scmp.ne.s32.totalorder %s933_s24, 0 }
  0x9d   : > { %p941_p10 = scmp.ge.s32.totalorder %s681_s14, 2  ;;  %s337_s19 = scalar_lea.sflag [#allocation4], %s336_s15 }
  0x9f   : > { %p467_p12 = pnand %p941_p10, %p940_p7 }
  0xa1   : > { %656 = dma.done.wait (!%p467_p12), %s337_s19, 32  }
  0xa2   : > { %658 = vsyncadd (!%p467_p12), %s337_s19, 4294967264  ;;  %s21_s14 = sadd.s32 1, %s681_s14   ;;  %s942_s9 = smov %s665_s10 }
  0xa3   : > { %p18_p9 = scmp.ge.s32.totalorder %s21_s14, 4   ;;  %s943_s10 = smov %s669_s11 }
  0xa4   : > { %s944_s11 = smov %s760_s23  ;;  %s945_s12 = smov %s677_s13 }
  0xa5   : > { %s946_s13 = smov %s948_s17  ;;  %20 = sbr.rel (!%p18_p9) target bundleno = 8 (0x8), region = 93 }
  0xac   :  { %342 = vsyncpa [#allocation3], 1 }
  0xad   :  { %344 = vsyncpa [#allocation3 + $0x1], 1 }
  0xae   :  { %345 = vsyncpa [#allocation6], 1 }
  0xaf   :  { %347 = vsyncpa [#allocation6 + $0x1], 1 }
  0xb0   :  { %348 = vsyncpa [#allocation4], 1 }
  0xb1   :  { %350 = vsyncpa [#allocation4 + $0x1], 1 }

</bundles_post_ra>
